<compile_context>
chip_gen: v6e
topology: v6e:2x2x1
jax: 0.10.0
libtpu: 0.0.40
codegen_flags: <defaults>
</compile_context>

<pallas_src>
import functools

import jax
import jax.numpy as jnp
from jax import lax
from jax.experimental import pallas as pl
from jax.experimental.pallas import tpu as pltpu


def _round_up(x, m):
    return (x + m - 1) // m * m


def _sepconv_kernel(x_ref, dw_w_ref, dw_b_ref, pw_w_ref, pw_b_ref, o_ref, *,
                    cin, cout, l_out, deltas):
    # x_ref:    (1, Cin, L_src)   flattened, spatially padded input (auto-pipelined VMEM)
    # dw_w_ref: (KH*KW, Cin, 1)   depthwise tap weights (lane-broadcastable)
    # dw_b_ref: (Cin, 1)          depthwise bias
    # pw_w_ref: (Cout, Cin)       pointwise 1x1 weights
    # pw_b_ref: (Cout, 1)         pointwise bias
    # o_ref:    (1, Cout, L_out)  flattened output block (lane-dense, unmasked stores)

    # Stage 1: depthwise conv + bias + ReLU.  Each tap is a static lane-shifted
    # window of the flattened padded image; spatial zero padding is already in the
    # buffer, so no boundary masks are needed.  Result stays in registers.
    acc = jnp.broadcast_to(dw_b_ref[...], (cin, l_out)).astype(jnp.float32)
    for t, delta in enumerate(deltas):
        window = x_ref[0, :, delta:delta + l_out].astype(jnp.float32)
        acc = acc + window * dw_w_ref[t]
    dw_act = jnp.maximum(acc, 0.0)                       # (Cin, L_out), SSA value

    # Stage 2: pointwise 1x1 conv (+bias) as Cin broadcast FMAs on the VPU, writing
    # straight into the lane-dense output block.
    # TODO(synk): for Cin/Cout >= ~64 switch this stage to a (Cout,Cin)x(Cin,L)
    # jnp.dot on the MXU; at 4x8 channels the VPU broadcast form is cheaper.
    out = jnp.broadcast_to(pw_b_ref[...], (cout, l_out)).astype(jnp.float32)
    for c in range(cin):
        out = out + dw_act[c:c + 1, :] * pw_w_ref[:, c:c + 1]
    o_ref[0] = out.astype(o_ref.dtype)


def sepconv2d_pallas(x_nchw, dw_weight, dw_bias, pw_weight, pw_bias,
                     kernel_size, stride=1, padding=0, dilation=1):
    """x_nchw: (N, Cin, H, W). Weights in PyTorch layouts:
       dw_weight: (Cin, 1, KH, KW), dw_bias: (Cin,)
       pw_weight: (Cout, Cin, 1, 1), pw_bias: (Cout,)
    Returns (N, Cout, H_out, W_out)."""
    n, cin, h, w = x_nchw.shape
    cout = pw_weight.shape[0]
    kh = kw = int(kernel_size)

    h_out = (h + 2 * padding - dilation * (kh - 1) - 1) // stride + 1
    w_out = (w + 2 * padding - dilation * (kw - 1) - 1) // stride + 1

    # Wrapper-side work is pure layout: spatial zero pad, flatten spatial dims onto
    # the lane axis, pad the lane axis to a multiple of 128 (lane-dense blocks).
    x_pad = jnp.pad(x_nchw,
                    ((0, 0), (0, 0), (padding, padding), (padding, padding)))
    hp, wp = x_pad.shape[2], x_pad.shape[3]

    # Stride-1 ("full resolution") output extents on the padded-width grid; stride>1
    # is handled by decimating the full-resolution result after the kernel.
    h_full = hp - dilation * (kh - 1)
    w_full = wp - dilation * (kw - 1)

    l_out = _round_up(h_full * wp, 128)
    deltas = tuple((kh_i * wp + kw_i) * dilation
                   for kh_i in range(kh) for kw_i in range(kw))
    delta_max = deltas[-1]
    l_src = _round_up(max(l_out + delta_max, hp * wp), 128)

    x_flat = jnp.pad(x_pad.reshape(n, cin, hp * wp),
                     ((0, 0), (0, 0), (0, l_src - hp * wp)))

    # Small per-channel params, pre-shaped for lane/sublane broadcast in the kernel.
    dw_w_k = (dw_weight.reshape(cin, kh * kw).T
              .reshape(kh * kw, cin, 1).astype(jnp.float32))
    dw_b_k = dw_bias.reshape(cin, 1).astype(jnp.float32)
    pw_w_k = pw_weight.reshape(cout, cin).astype(jnp.float32)
    pw_b_k = pw_bias.reshape(cout, 1).astype(jnp.float32)

    # Whole-image-per-batch blocks keep the DMA in a few long contiguous bursts and
    # let the auto-pipeline overlap them with compute.  Keep the footprint well
    # inside v7x's 64 MiB physical VMEM (double-buffered inputs + outputs).
    vmem_bytes = 4 * (2 * cin * l_src + 2 * cout * l_out
                      + kh * kw * cin + cin + cout * cin + cout)
    # TODO(synk): for large images (footprint above this cap) switch to halo'd
    # row-strip tiling with grid=(N, row_tiles) instead of whole-image blocks.
    assert vmem_bytes < 32 * 1024 * 1024, (
        f"per-image VMEM footprint too large for single-DMA path: {vmem_bytes} B")

    kernel = functools.partial(_sepconv_kernel, cin=cin, cout=cout,
                               l_out=l_out, deltas=deltas)

    out_flat = pl.pallas_call(
        kernel,
        out_shape=jax.ShapeDtypeStruct((n, cout, l_out), x_nchw.dtype),
        grid=(n,),
        in_specs=[
            pl.BlockSpec((1, cin, l_src), lambda i: (i, 0, 0)),
            pl.BlockSpec((kh * kw, cin, 1), lambda i: (0, 0, 0)),
            pl.BlockSpec((cin, 1), lambda i: (0, 0)),
            pl.BlockSpec((cout, cin), lambda i: (0, 0)),
            pl.BlockSpec((cout, 1), lambda i: (0, 0)),
        ],
        out_specs=pl.BlockSpec((1, cout, l_out), lambda i: (i, 0, 0)),
        compiler_params=pltpu.CompilerParams(
            dimension_semantics=("parallel",)),
    )(x_flat, dw_w_k, dw_b_k, pw_w_k, pw_b_k)

    # Wrapper-side layout only: drop the lane-padding tail and the padded-width junk
    # columns, then decimate rows/cols once for stride.
    out_full = out_flat[:, :, :h_full * wp].reshape(n, cout, h_full, wp)
    out_full = out_full[:, :, :, :w_full]
    out = out_full[:, :, ::stride, ::stride][:, :, :h_out, :w_out]
    return out


def sepconv2d_ref(x_nchw, dw_weight, dw_bias, pw_weight, pw_bias,
                  kernel_size, stride=1, padding=0, dilation=1):
    """Pure-JAX reference mirroring torch.nn.Conv2d semantics."""
    cin = x_nchw.shape[1]
    y = lax.conv_general_dilated(
        x_nchw, dw_weight,
        window_strides=(stride, stride),
        padding=[(padding, padding), (padding, padding)],
        rhs_dilation=(dilation, dilation),
        dimension_numbers=("NCHW", "OIHW", "NCHW"),
        feature_group_count=cin)
    y = y + dw_bias.reshape(1, -1, 1, 1)
    y = jnp.maximum(y, 0.0)
    y = lax.conv_general_dilated(
        y, pw_weight,
        window_strides=(1, 1),
        padding=[(0, 0), (0, 0)],
        dimension_numbers=("NCHW", "OIHW", "NCHW"))
    y = y + pw_bias.reshape(1, -1, 1, 1)
    return y


if __name__ == "__main__":
    key = jax.random.PRNGKey(0)
    k_x, k_dw, k_dwb, k_pw, k_pwb = jax.random.split(key, 5)

    # SepConv2d(in_channels=4, out_channels=8, kernel_size=3, stride=1, padding=1)
    N, C_IN, C_OUT, H, W = 2, 4, 8, 16, 16
    K, STRIDE, PAD, DIL = 3, 1, 1, 1

    x = jax.random.normal(k_x, (N, C_IN, H, W), dtype=jnp.float32)
    dw_weight = jax.random.normal(k_dw, (C_IN, 1, K, K), dtype=jnp.float32) * 0.1
    dw_bias = jax.random.normal(k_dwb, (C_IN,), dtype=jnp.float32) * 0.1
    pw_weight = jax.random.normal(k_pw, (C_OUT, C_IN, 1, 1), dtype=jnp.float32) * 0.1
    pw_bias = jax.random.normal(k_pwb, (C_OUT,), dtype=jnp.float32) * 0.1

    out = sepconv2d_pallas(x, dw_weight, dw_bias, pw_weight, pw_bias,
                           kernel_size=K, stride=STRIDE, padding=PAD, dilation=DIL)
    out = jax.block_until_ready(out)

    ref = sepconv2d_ref(x, dw_weight, dw_bias, pw_weight, pw_bias,
                        kernel_size=K, stride=STRIDE, padding=PAD, dilation=DIL)
    ref = jax.block_until_ready(ref)

    assert out.shape == (N, C_OUT, H, W), out.shape
    max_err = float(jnp.max(jnp.abs(out - ref)))
    assert jnp.allclose(out, ref, atol=1e-4, rtol=1e-4), max_err
    print("KERNEL_OK")
</pallas_src>

<mosaic_0001>
module attributes {stable_mosaic.version = 11 : i64} {
  func.func @_sepconv_kernel(%arg0: i32, %arg1: memref<1x4x512xf32, #tpu.memory_space<vmem>>, %arg2: memref<9x4x1xf32, #tpu.memory_space<vmem>>, %arg3: memref<4x1xf32, #tpu.memory_space<vmem>>, %arg4: memref<8x4xf32, #tpu.memory_space<vmem>>, %arg5: memref<8x1xf32, #tpu.memory_space<vmem>>, %arg6: memref<1x8x384xf32, #tpu.memory_space<vmem>>) attributes {dimension_semantics = [#tpu.dimension_semantics<parallel>], iteration_bounds = array<i64: 2>, scalar_prefetch = 0 : i64, scratch_operands = 0 : i64, tpu.core_type = #tpu.core_type<tc>, window_params = [{transform_indices = @transform_0, window_bounds = array<i64: 1, 4, 512>}, {pipeline_mode = #tpu.pipeline_mode<synchronous>, transform_indices = @transform_1, window_bounds = array<i64: 9, 4, 1>}, {pipeline_mode = #tpu.pipeline_mode<synchronous>, transform_indices = @transform_2, window_bounds = array<i64: 4, 1>}, {pipeline_mode = #tpu.pipeline_mode<synchronous>, transform_indices = @transform_3, window_bounds = array<i64: 8, 4>}, {pipeline_mode = #tpu.pipeline_mode<synchronous>, transform_indices = @transform_4, window_bounds = array<i64: 8, 1>}, {transform_indices = @transform_5, window_bounds = array<i64: 1, 8, 384>}]} {
    %c0 = arith.constant 0 : index
    %c0_0 = arith.constant 0 : index
    %0 = vector.load %arg3[%c0, %c0_0] : memref<4x1xf32, #tpu.memory_space<vmem>>, vector<4x1xf32>
    %1 = vector.shape_cast %0 : vector<4x1xf32> to vector<4x1xf32>
    %2 = vector.broadcast %1 : vector<4x1xf32> to vector<4x384xf32>
    %c0_1 = arith.constant 0 : index
    %c0_2 = arith.constant 0 : index
    %c0_3 = arith.constant 0 : index
    %3 = vector.load %arg1[%c0_1, %c0_2, %c0_3] : memref<1x4x512xf32, #tpu.memory_space<vmem>>, vector<1x4x384xf32>
    %4 = vector.shape_cast %3 : vector<1x4x384xf32> to vector<4x384xf32>
    %c0_4 = arith.constant 0 : index
    %c0_5 = arith.constant 0 : index
    %c0_6 = arith.constant 0 : index
    %5 = vector.load %arg2[%c0_4, %c0_5, %c0_6] : memref<9x4x1xf32, #tpu.memory_space<vmem>>, vector<1x4x1xf32>
    %6 = vector.shape_cast %5 : vector<1x4x1xf32> to vector<4x1xf32>
    %7 = vector.broadcast %6 : vector<4x1xf32> to vector<4x384xf32>
    %8 = arith.mulf %4, %7 : vector<4x384xf32>
    %9 = arith.addf %2, %8 : vector<4x384xf32>
    %c0_7 = arith.constant 0 : index
    %c0_8 = arith.constant 0 : index
    %c1 = arith.constant 1 : index
    %10 = vector.load %arg1[%c0_7, %c0_8, %c1] : memref<1x4x512xf32, #tpu.memory_space<vmem>>, vector<1x4x384xf32>
    %11 = vector.shape_cast %10 : vector<1x4x384xf32> to vector<4x384xf32>
    %c1_9 = arith.constant 1 : index
    %c0_10 = arith.constant 0 : index
    %c0_11 = arith.constant 0 : index
    %12 = vector.load %arg2[%c1_9, %c0_10, %c0_11] : memref<9x4x1xf32, #tpu.memory_space<vmem>>, vector<1x4x1xf32>
    %13 = vector.shape_cast %12 : vector<1x4x1xf32> to vector<4x1xf32>
    %14 = vector.broadcast %13 : vector<4x1xf32> to vector<4x384xf32>
    %15 = arith.mulf %11, %14 : vector<4x384xf32>
    %16 = arith.addf %9, %15 : vector<4x384xf32>
    %c0_12 = arith.constant 0 : index
    %c0_13 = arith.constant 0 : index
    %c2 = arith.constant 2 : index
    %17 = vector.load %arg1[%c0_12, %c0_13, %c2] : memref<1x4x512xf32, #tpu.memory_space<vmem>>, vector<1x4x384xf32>
    %18 = vector.shape_cast %17 : vector<1x4x384xf32> to vector<4x384xf32>
    %c2_14 = arith.constant 2 : index
    %c0_15 = arith.constant 0 : index
    %c0_16 = arith.constant 0 : index
    %19 = vector.load %arg2[%c2_14, %c0_15, %c0_16] : memref<9x4x1xf32, #tpu.memory_space<vmem>>, vector<1x4x1xf32>
    %20 = vector.shape_cast %19 : vector<1x4x1xf32> to vector<4x1xf32>
    %21 = vector.broadcast %20 : vector<4x1xf32> to vector<4x384xf32>
    %22 = arith.mulf %18, %21 : vector<4x384xf32>
    %23 = arith.addf %16, %22 : vector<4x384xf32>
    %c0_17 = arith.constant 0 : index
    %c0_18 = arith.constant 0 : index
    %c18 = arith.constant 18 : index
    %24 = vector.load %arg1[%c0_17, %c0_18, %c18] : memref<1x4x512xf32, #tpu.memory_space<vmem>>, vector<1x4x384xf32>
    %25 = vector.shape_cast %24 : vector<1x4x384xf32> to vector<4x384xf32>
    %c3 = arith.constant 3 : index
    %c0_19 = arith.constant 0 : index
    %c0_20 = arith.constant 0 : index
    %26 = vector.load %arg2[%c3, %c0_19, %c0_20] : memref<9x4x1xf32, #tpu.memory_space<vmem>>, vector<1x4x1xf32>
    %27 = vector.shape_cast %26 : vector<1x4x1xf32> to vector<4x1xf32>
    %28 = vector.broadcast %27 : vector<4x1xf32> to vector<4x384xf32>
    %29 = arith.mulf %25, %28 : vector<4x384xf32>
    %30 = arith.addf %23, %29 : vector<4x384xf32>
    %c0_21 = arith.constant 0 : index
    %c0_22 = arith.constant 0 : index
    %c19 = arith.constant 19 : index
    %31 = vector.load %arg1[%c0_21, %c0_22, %c19] : memref<1x4x512xf32, #tpu.memory_space<vmem>>, vector<1x4x384xf32>
    %32 = vector.shape_cast %31 : vector<1x4x384xf32> to vector<4x384xf32>
    %c4 = arith.constant 4 : index
    %c0_23 = arith.constant 0 : index
    %c0_24 = arith.constant 0 : index
    %33 = vector.load %arg2[%c4, %c0_23, %c0_24] : memref<9x4x1xf32, #tpu.memory_space<vmem>>, vector<1x4x1xf32>
    %34 = vector.shape_cast %33 : vector<1x4x1xf32> to vector<4x1xf32>
    %35 = vector.broadcast %34 : vector<4x1xf32> to vector<4x384xf32>
    %36 = arith.mulf %32, %35 : vector<4x384xf32>
    %37 = arith.addf %30, %36 : vector<4x384xf32>
    %c0_25 = arith.constant 0 : index
    %c0_26 = arith.constant 0 : index
    %c20 = arith.constant 20 : index
    %38 = vector.load %arg1[%c0_25, %c0_26, %c20] : memref<1x4x512xf32, #tpu.memory_space<vmem>>, vector<1x4x384xf32>
    %39 = vector.shape_cast %38 : vector<1x4x384xf32> to vector<4x384xf32>
    %c5 = arith.constant 5 : index
    %c0_27 = arith.constant 0 : index
    %c0_28 = arith.constant 0 : index
    %40 = vector.load %arg2[%c5, %c0_27, %c0_28] : memref<9x4x1xf32, #tpu.memory_space<vmem>>, vector<1x4x1xf32>
    %41 = vector.shape_cast %40 : vector<1x4x1xf32> to vector<4x1xf32>
    %42 = vector.broadcast %41 : vector<4x1xf32> to vector<4x384xf32>
    %43 = arith.mulf %39, %42 : vector<4x384xf32>
    %44 = arith.addf %37, %43 : vector<4x384xf32>
    %c0_29 = arith.constant 0 : index
    %c0_30 = arith.constant 0 : index
    %c36 = arith.constant 36 : index
    %45 = vector.load %arg1[%c0_29, %c0_30, %c36] : memref<1x4x512xf32, #tpu.memory_space<vmem>>, vector<1x4x384xf32>
    %46 = vector.shape_cast %45 : vector<1x4x384xf32> to vector<4x384xf32>
    %c6 = arith.constant 6 : index
    %c0_31 = arith.constant 0 : index
    %c0_32 = arith.constant 0 : index
    %47 = vector.load %arg2[%c6, %c0_31, %c0_32] : memref<9x4x1xf32, #tpu.memory_space<vmem>>, vector<1x4x1xf32>
    %48 = vector.shape_cast %47 : vector<1x4x1xf32> to vector<4x1xf32>
    %49 = vector.broadcast %48 : vector<4x1xf32> to vector<4x384xf32>
    %50 = arith.mulf %46, %49 : vector<4x384xf32>
    %51 = arith.addf %44, %50 : vector<4x384xf32>
    %c0_33 = arith.constant 0 : index
    %c0_34 = arith.constant 0 : index
    %c37 = arith.constant 37 : index
    %52 = vector.load %arg1[%c0_33, %c0_34, %c37] : memref<1x4x512xf32, #tpu.memory_space<vmem>>, vector<1x4x384xf32>
    %53 = vector.shape_cast %52 : vector<1x4x384xf32> to vector<4x384xf32>
    %c7 = arith.constant 7 : index
    %c0_35 = arith.constant 0 : index
    %c0_36 = arith.constant 0 : index
    %54 = vector.load %arg2[%c7, %c0_35, %c0_36] : memref<9x4x1xf32, #tpu.memory_space<vmem>>, vector<1x4x1xf32>
    %55 = vector.shape_cast %54 : vector<1x4x1xf32> to vector<4x1xf32>
    %56 = vector.broadcast %55 : vector<4x1xf32> to vector<4x384xf32>
    %57 = arith.mulf %53, %56 : vector<4x384xf32>
    %58 = arith.addf %51, %57 : vector<4x384xf32>
    %c0_37 = arith.constant 0 : index
    %c0_38 = arith.constant 0 : index
    %c38 = arith.constant 38 : index
    %59 = vector.load %arg1[%c0_37, %c0_38, %c38] : memref<1x4x512xf32, #tpu.memory_space<vmem>>, vector<1x4x384xf32>
    %60 = vector.shape_cast %59 : vector<1x4x384xf32> to vector<4x384xf32>
    %c8 = arith.constant 8 : index
    %c0_39 = arith.constant 0 : index
    %c0_40 = arith.constant 0 : index
    %61 = vector.load %arg2[%c8, %c0_39, %c0_40] : memref<9x4x1xf32, #tpu.memory_space<vmem>>, vector<1x4x1xf32>
    %62 = vector.shape_cast %61 : vector<1x4x1xf32> to vector<4x1xf32>
    %63 = vector.broadcast %62 : vector<4x1xf32> to vector<4x384xf32>
    %64 = arith.mulf %60, %63 : vector<4x384xf32>
    %65 = arith.addf %58, %64 : vector<4x384xf32>
    %cst = arith.constant 0.000000e+00 : f32
    %66 = vector.broadcast %cst : f32 to vector<4x384xf32>
    %67 = arith.maximumf %65, %66 : vector<4x384xf32>
    %c0_41 = arith.constant 0 : index
    %c0_42 = arith.constant 0 : index
    %68 = vector.load %arg5[%c0_41, %c0_42] : memref<8x1xf32, #tpu.memory_space<vmem>>, vector<8x1xf32>
    %69 = vector.shape_cast %68 : vector<8x1xf32> to vector<8x1xf32>
    %70 = vector.broadcast %69 : vector<8x1xf32> to vector<8x384xf32>
    %71 = vector.extract_strided_slice %67 {offsets = [0, 0], sizes = [1, 384], strides = [1, 1]} : vector<4x384xf32> to vector<1x384xf32>
    %c0_43 = arith.constant 0 : index
    %c0_44 = arith.constant 0 : index
    %72 = vector.load %arg4[%c0_43, %c0_44] : memref<8x4xf32, #tpu.memory_space<vmem>>, vector<8x1xf32>
    %73 = vector.broadcast %71 : vector<1x384xf32> to vector<8x384xf32>
    %74 = vector.broadcast %72 : vector<8x1xf32> to vector<8x384xf32>
    %75 = arith.mulf %73, %74 : vector<8x384xf32>
    %76 = arith.addf %70, %75 : vector<8x384xf32>
    %77 = vector.extract_strided_slice %67 {offsets = [1, 0], sizes = [1, 384], strides = [1, 1]} : vector<4x384xf32> to vector<1x384xf32>
    %c0_45 = arith.constant 0 : index
    %c1_46 = arith.constant 1 : index
    %78 = vector.load %arg4[%c0_45, %c1_46] : memref<8x4xf32, #tpu.memory_space<vmem>>, vector<8x1xf32>
    %79 = vector.broadcast %77 : vector<1x384xf32> to vector<8x384xf32>
    %80 = vector.broadcast %78 : vector<8x1xf32> to vector<8x384xf32>
    %81 = arith.mulf %79, %80 : vector<8x384xf32>
    %82 = arith.addf %76, %81 : vector<8x384xf32>
    %83 = vector.extract_strided_slice %67 {offsets = [2, 0], sizes = [1, 384], strides = [1, 1]} : vector<4x384xf32> to vector<1x384xf32>
    %c0_47 = arith.constant 0 : index
    %c2_48 = arith.constant 2 : index
    %84 = vector.load %arg4[%c0_47, %c2_48] : memref<8x4xf32, #tpu.memory_space<vmem>>, vector<8x1xf32>
    %85 = vector.broadcast %83 : vector<1x384xf32> to vector<8x384xf32>
    %86 = vector.broadcast %84 : vector<8x1xf32> to vector<8x384xf32>
    %87 = arith.mulf %85, %86 : vector<8x384xf32>
    %88 = arith.addf %82, %87 : vector<8x384xf32>
    %89 = vector.extract_strided_slice %67 {offsets = [3, 0], sizes = [1, 384], strides = [1, 1]} : vector<4x384xf32> to vector<1x384xf32>
    %c0_49 = arith.constant 0 : index
    %c3_50 = arith.constant 3 : index
    %90 = vector.load %arg4[%c0_49, %c3_50] : memref<8x4xf32, #tpu.memory_space<vmem>>, vector<8x1xf32>
    %91 = vector.broadcast %89 : vector<1x384xf32> to vector<8x384xf32>
    %92 = vector.broadcast %90 : vector<8x1xf32> to vector<8x384xf32>
    %93 = arith.mulf %91, %92 : vector<8x384xf32>
    %94 = arith.addf %88, %93 : vector<8x384xf32>
    %c0_51 = arith.constant 0 : index
    %c0_52 = arith.constant 0 : index
    %c0_53 = arith.constant 0 : index
    %95 = vector.load %arg6[%c0_51, %c0_52, %c0_53] : memref<1x8x384xf32, #tpu.memory_space<vmem>>, vector<1x8x384xf32>
    %96 = vector.shape_cast %95 : vector<1x8x384xf32> to vector<8x384xf32>
    %97 = vector.shape_cast %94 : vector<8x384xf32> to vector<1x8x384xf32>
    tpu.vector_store %arg6[%c0_51, %c0_52, %c0_53], %97 {strides = array<i32>} : memref<1x8x384xf32, #tpu.memory_space<vmem>>, vector<1x8x384xf32>,
    return
  }
  func.func @transform_0(%arg0: i32) -> (i32, i32, i32) {
    %c0_i32 = arith.constant 0 : i32
    %c0_i32_0 = arith.constant 0 : i32
    %c0_i32_1 = arith.constant 0 : i32
    return %arg0, %c0_i32, %c0_i32_0 : i32, i32, i32
  }
  func.func @transform_1(%arg0: i32) -> (i32, i32, i32) {
    %c0_i32 = arith.constant 0 : i32
    %c0_i32_0 = arith.constant 0 : i32
    %c0_i32_1 = arith.constant 0 : i32
    %c0_i32_2 = arith.constant 0 : i32
    return %c0_i32, %c0_i32_0, %c0_i32_1 : i32, i32, i32
  }
  func.func @transform_2(%arg0: i32) -> (i32, i32) {
    %c0_i32 = arith.constant 0 : i32
    %c0_i32_0 = arith.constant 0 : i32
    %c0_i32_1 = arith.constant 0 : i32
    return %c0_i32, %c0_i32_0 : i32, i32
  }
  func.func @transform_3(%arg0: i32) -> (i32, i32) {
    %c0_i32 = arith.constant 0 : i32
    %c0_i32_0 = arith.constant 0 : i32
    %c0_i32_1 = arith.constant 0 : i32
    return %c0_i32, %c0_i32_0 : i32, i32
  }
  func.func @transform_4(%arg0: i32) -> (i32, i32) {
    %c0_i32 = arith.constant 0 : i32
    %c0_i32_0 = arith.constant 0 : i32
    %c0_i32_1 = arith.constant 0 : i32
    return %c0_i32, %c0_i32_0 : i32, i32
  }
  func.func @transform_5(%arg0: i32) -> (i32, i32, i32) {
    %c0_i32 = arith.constant 0 : i32
    %c0_i32_0 = arith.constant 0 : i32
    %c0_i32_1 = arith.constant 0 : i32
    return %arg0, %c0_i32, %c0_i32_0 : i32, i32, i32
  }
}

</mosaic_0001>

<bundles_post_ra>
// kernel: tpu_custom_call.1
= control target key start
LH: loop header
LB: loop body
LE: loop exit
PB: predicated region body
PF: predicated region fallthrough
CT: control target
= control target key end

     0   :  { %10 = vsyncpa [#allocation3], 0  ;;  %s1155_s0 = inlined_call_operand.vmem [shape: f32[2,4,512], index: 0, kind: input, shape index: {}]   ;;  %s1156_s1 = inlined_call_operand.vmem [shape: f32[9,4,1], index: 1, kind: input, shape index: {}]   ;;  %s1157_s2 = inlined_call_operand.vmem [shape: f32[4,1], index: 2, kind: input, shape index: {}]   ;;  %s1158_s3 = inlined_call_operand.vmem [shape: f32[8,4], index: 3, kind: input, shape index: {}]   ;;  %s1159_s4 = inlined_call_operand.vmem [shape: f32[8,1], index: 4, kind: input, shape index: {}]   ;;  %s1160_s5 = inlined_call_operand.hbm [shape: f32[2,8,384], index: 5, kind: output, shape index: {}]  }
   0x1   :  { %12 = vsyncpa [#allocation3 + $0x1], 0  ;;  %s932_s18 = smov 0   ;;  %s934_s19 = smov 0  }
   0x2   :  { %s936_s20 = smov 0   ;;  %s938_s21 = smov 0  }
   0x3 LB: > { %s953_s22 = sadd.s32 4294967295, %s886_s21   ;;  %s748_s23 = sadd.s32 4294967294, %s886_s21   ;;  %s886_s21 = sphi %s938_s21, %s1166_s21   ;;  %s882_s20 = sphi %s936_s20, %s1165_s20   ;;  %s878_s19 = sphi %s934_s19, %s1164_s19   ;;  %s874_s18 = sphi %s932_s18, %s1163_s18  }
   0x4   : > { %s957_s24 = sadd.s32 1, %s886_s21   ;;  %s135_s25 = sadd.s32 1, %s882_s20 }
   0x5   : > { %s132_s26 = ssub.s32 %s886_s21, %s957_s24  ;;  %p145_p0 = scmp.ne.s32.totalorder %s882_s20, %s878_s19 }
   0x6   : > { %p133_p1 = scmp.eq.s32.totalorder %s132_s26, 0  ;;  %p146_p2 = scmp.eq.s32.totalorder %s953_s22, 1 }
   0x7   : > { %p151_p3 = scmp.ne.s32.totalorder %s878_s19, %s874_s18  ;;  %p152_p4 = scmp.eq.s32.totalorder %s748_s23, 1 }
   0x8   : > { %s968_s27 = scalar_select %p133_p1, %s882_s20, %s135_s25  }
   0x9   : > { %p970_p5 = por %p146_p2, %p145_p0  ;;  %p974_p6 = por %p152_p4, %p151_p3 }
   0xa   : > { %p751_p7 = scmp.ge.s32.totalorder %s886_s21, 1  ;;  %p190_p8 = scmp.lt.s32.totalorder %s886_s21, 3 }
   0xc   : > { %p191_p9 = pnand %p751_p7, %p190_p8 }
   0xd   : > { %p218_p10 = scmp.lt.s32.totalorder (!%p191_p9), %s953_s22, 1  ;;  %s892_s23 = smov (!%p191_p9), 127  }
   0xe   : > { %194 = sbr.rel (%p191_p9) target bundleno = 362 (0x16a), region = 40  ;;  %s893_s25 = smov (!%p191_p9), 126  }
   0xf   : > { %s894_s26 = smov (!%p191_p9), 110   ;;  %s895_s30 = smov (!%p191_p9), 109  }
  0x10   : > { %s896_s6 = smov (!%p191_p9), 108   ;;  %s897_s7 = smov (!%p191_p9), 92  }
  0x11   : > { %s898_s8 = smov (!%p191_p9), 91   ;;  %s899_s9 = smov (!%p191_p9), 90  }
  0x12   : > { %s215_s10 = sand.u32 (!%p191_p9), 1, %s878_s19   ;;  %s767_s12 = smul.u32 (!%p191_p9), 384, %s953_s22 }
  0x13   : > { %v756_v0 = vld [vmem:[%s1156_s1 + $0xc] sm:$0xf]  ;;  %v754_v1 = vld [vmem:[%s1156_s1 + $0x4] sm:$0xf]  ;;  %v888_v2 = vmov 0   ;;  %v889_v13 = vmov 1   ;;  %v239_v17 = vlaneseq }
  0x14   : > { %821 = vset.pattern.permute.xlu1 %v888_v2  ;;  %820 = vset.pattern.permute.xlu0 %v888_v2  ;;  %v757_v3 = vld [vmem:[%s1156_s1 + $0x10] sm:$0xf]  ;;  %v755_v4 = vld [vmem:[%s1156_s1 + $0x8] sm:$0xf]  ;;  %v759_v5 = vld [vmem:[%s1156_s1 + $0x18] sm:$0xf] }
  0x15   : > { %338 = vperm.xlu1 %821, %v756_v0   ;;  %258 = vperm.xlu0 %820, %v754_v1   ;;  %v758_v6 = vld [vmem:[%s1156_s1 + $0x14] sm:$0xf]  ;;  %v761_v7 = vld [vmem:[%s1156_s1 + $0x20] sm:$0xf]  ;;  %v760_v8 = vld [vmem:[%s1156_s1 + $0x1c] sm:$0xf] }
  0x16   : > { %v231_v9 = vld [vmem:[%s1156_s1] sm:$0xf]  ;;  %v890_v14 = vmov 2   ;;  %v891_v15 = vmov 839922192   ;;  %s219_s13 = scalar_select %p218_p10, %s953_s22, 1 }
  0x17   : > { %v223_v10 = vld [vmem:[%s1157_s2] sm:$0xf]  ;;  %v237_v16 = vunpack.c.l.s4 %v891_v15  ;;  %v1021_v19 = vshrl.u32 %v239_v17, 7  ;;  %vm282_vm0 = vcmask 1039360   ;;  %vm322_vm1 = vcmask 1031168   ;;  %s766_s11 = smul.u32 24, %s215_s10 }
  0x18   : > { %v1013_v11 = vld [vmem:[%s1158_s3] sm:$0xff]  ;;  %s765_s14 = sshll.u32 %s219_s13, 4  ;;  %vm362_vm2 = vcmask 900096   ;;  %vm402_vm3 = vcmask 891904   ;;  %vm442_vm4 = vcmask 883712   ;;  %vm482_vm5 = vcmask 752640  }
  0x19   : > { %378 = vperm.xlu1 %821, %v757_v3   ;;  %298 = vperm.xlu0 %820, %v755_v4   ;;  %v575_v12 = vld [vmem:[%s1159_s4] sm:$0xff]  ;;  %v238_v18 = vunpack.c.0.s8 %v237_v16  ;;  %s222_s17 = scalar_lea.vmem %s1155_s0, %s765_s14  ;;  %vm522_vm6 = vcmask 744448   ;;  %vm562_vm7 = vcmask 736256   ;;  %s217_s13 = scalar_lea.vmem [#allocation2], %s766_s11 }
  0x1a   : > { %v1029_v21 = vld [vmem:[%s222_s17] sm:$0xff]  ;;  %v1032_v24 = vld [vmem:[%s222_s17 + $0x8] sm:$0xff]  ;;  %s689_s14 = sshll.u32 %s217_s13, 4  ;;  %s675_s22 = scalar_lea.sflag [#allocation3], %s215_s10  ;;  %s1114_s14 = int_to_ptr.vmem [resolvable:$true] %s689_s14 }
  0x1b   : > { %v1024_v20 = vsub.s32 %v238_v18, %v1021_v19  ;;  %v230_v40 = vld [vmem:[%s222_s17 + $0x8] sm:$0xf]  ;;  %s1112_s17 = scalar_lea.hbm %s1160_s5, %s767_s12 }
  0x1d   : > { %458 = vperm.xlu1 %821, %v759_v5   ;;  %418 = vperm.xlu0 %820, %v758_v6  }
  0x21   : > { %538 = vperm.xlu1 %821, %v761_v7   ;;  %498 = vperm.xlu0 %820, %v760_v8  }
  0x25   : > { %234 = vperm.xlu0 %820, %v231_v9   ;;  %226 = vperm.xlu1 %821, %v223_v10  }
  0x29   : > { %596 = vperm.xlu0 %820, %v1013_v11   ;;  %578 = vperm.xlu1 %821, %v575_v12  }
  0x2d   : > { %822 = vset.pattern.permute.xlu0 %v889_v13  ;;  %823 = vset.pattern.permute.xlu1 %v890_v14  ;;  %v900_v13 = vmov 3  }
  0x90   : > { %v259_v22 = vpop.permute.xlu0 %258  ;;  %v339_v33 = vpop.permute.xlu1 %338 }
  0x91   : > { %v266_v23 = vrot.slane %v259_v22, %v1024_v20  ;;  %v346_v34 = vrot.slane %v339_v33, %v1024_v20 }
  0x93   : > { %v268_v25 = vmul.f32 %v1029_v21, %v266_v23  ;;  %v269_v27 = vmul.f32 %v1032_v24, %v266_v23  ;;  %v348_v38 = vmul.f32 %v346_v34, %v1029_v21  ;;  %v349_v47 = vmul.f32 %v346_v34, %v1032_v24 }
  0x94   : > { %v299_v26 = vpop.permute.xlu0 %298  ;;  %v379_v46 = vpop.permute.xlu1 %378 }
  0x95   : > { %v306_v28 = vrot.slane %v299_v26, %v1024_v20  ;;  %274 = vrot.lane.b32.xlu0 %v268_v25, %s892_s23  ;;  %v272_v29 = vcombine.high %v268_v25, %v268_v25  ;;  %v273_v32 = vcombine.high %v269_v27, %v269_v27  ;;  %v352_v45 = vcombine.high %v348_v38, %v348_v38 }
  0x96   : > { %v386_v48 = vrot.slane %v379_v46, %v1024_v20  ;;  %v353_v50 = vcombine.high %v349_v47, %v349_v47 }
  0x97   : > { %276 = vrot.lane.b32.xlu1 %v272_v29, %s892_s23  ;;  %v308_v31 = vmul.f32 %v1029_v21, %v306_v28  ;;  %v309_v36 = vmul.f32 %v1032_v24, %v306_v28 }
  0x98   : > { %v419_v30 = vpop.permute.xlu0 %418  ;;  %v388_v49 = vmul.f32 %v386_v48, %v1029_v21  ;;  %v389_v51 = vmul.f32 %v386_v48, %v1032_v24  ;;  %v459_v56 = vpop.permute.xlu1 %458 }
  0x99   : > { %278 = vrot.lane.b32.xlu0 %v269_v27, %s892_s23  ;;  %v312_v37 = vcombine.high %v308_v31, %v308_v31  ;;  %v313_v42 = vcombine.high %v309_v36, %v309_v36  ;;  %v426_v52 = vrot.slane %v419_v30, %v1024_v20  ;;  %v466_v57 = vrot.slane %v459_v56, %v1024_v20 }
  0x9a   : > { %v392_v53 = vcombine.high %v388_v49, %v388_v49  ;;  %v393_v55 = vcombine.high %v389_v51, %v389_v51 }
  0x9b   : > { %280 = vrot.lane.b32.xlu1 %v273_v32, %s892_s23  ;;  %v428_v54 = vmul.f32 %v426_v52, %v1029_v21  ;;  %v429_v58 = vmul.f32 %v426_v52, %v1032_v24  ;;  %v468_v60 = vmul.f32 %v466_v57, %v1029_v21  ;;  %v469_v62 = vmul.f32 %v466_v57, %v1032_v24  ;;  %s826_s23 = scalar_lea.vmem %s1114_s14, 384 }
  0x9c   : > { %v499_v35 = vpop.permute.xlu0 %498  ;;  %v539_v3 = vpop.permute.xlu1 %538  ;;  %p827_p11 = scmp.ne.s32.totalorder %s1114_s14, %s826_s23 }
  0x9d   : > { %314 = vrot.lane.b32.xlu0 %v308_v31, %s893_s25  ;;  %v432_v59 = vcombine.high %v428_v54, %v428_v54  ;;  %v433_v61 = vcombine.high %v429_v58, %v429_v58  ;;  %v506_v63 = vrot.slane %v499_v35, %v1024_v20  ;;  %v472_v0 = vcombine.high %v468_v60, %v468_v60 }
  0x9e   : > { %v473_v2 = vcombine.high %v469_v62, %v469_v62  ;;  %v546_v4 = vrot.slane %v539_v3, %v1024_v20  ;;  %p828_p12 = pnand %p827_p11, %p970_p5 }
  0x9f   : > { %316 = vrot.lane.b32.xlu1 %v312_v37, %s893_s25  ;;  %v508_v1 = vmul.f32 %v506_v63, %v1029_v21  ;;  %v509_v5 = vmul.f32 %v506_v63, %v1032_v24 }
  0xa0   : > { %v235_v39 = vpop.permute.xlu0 %234  ;;  %v548_v7 = vmul.f32 %v546_v4, %v1029_v21  ;;  %v549_v9 = vmul.f32 %v546_v4, %v1032_v24  ;;  %v227_v14 = vpop.permute.xlu1 %226  ;;  %p829_p13 = pneg %p828_p12 }
  0xa1   : > { %v242_v41 = vrot.slane %v235_v39, %v1024_v20  ;;  %318 = vrot.lane.b32.xlu0 %v309_v36, %s893_s25  ;;  %v512_v6 = vcombine.high %v508_v1, %v508_v1  ;;  %v513_v8 = vcombine.high %v509_v5, %v509_v5 }
  0xa2   : > { %v552_v10 = vcombine.high %v548_v7, %v548_v7  ;;  %v553_v12 = vcombine.high %v549_v9, %v549_v9 }
  0xa3   : > { %v1043_v43 = vmul.f32 %v1029_v21, %v242_v41  ;;  %v1045_v44 = vmul.f32 %v242_v41, %v230_v40  ;;  %320 = vrot.lane.b32.xlu1 %v313_v42, %s893_s25  ;;  %s901_s25 = smov [#allocation2]  }
  0xa4   : > { %v1066_v15 = vpop.permute.xlu0 %596  ;;  %v1068_v16 = vpop.permute.xlu1 %578 }
  0xa5   : > { %354 = vrot.lane.b32.xlu0 %v348_v38, %s894_s26  ;;  %v247_v38 = vcombine.high %v1043_v43, %v1043_v43  ;;  %v249_v41 = vadd.f32 %v1043_v43, %v227_v14 }
  0xa7   : > { %356 = vrot.lane.b32.xlu1 %v352_v45, %s894_s26 }
  0xa9   : > { %358 = vrot.lane.b32.xlu0 %v349_v47, %s894_s26  ;;  %v250_v47 = vadd.f32 %v247_v38, %v227_v14 }
  0xab   : > { %360 = vrot.lane.b32.xlu1 %v353_v50, %s894_s26  ;;  %s830_s26 = sshll.u32 %s901_s25, 4  ;;  %s831_s26 = int_to_ptr.vmem [resolvable:$false] %s830_s26 }
  0xac   : > { %p833_p0 = scmp.lt.s32.totalorder %s1114_s14, %s831_s26 }
  0xad   : > { %394 = vrot.lane.b32.xlu0 %v388_v49, %s895_s30 }
  0xaf   : > { %396 = vrot.lane.b32.xlu1 %v392_v53, %s895_s30  ;;  %v251_v53 = vadd.f32 %v1045_v44, %v227_v14 }
  0xb1   : > { %398 = vrot.lane.b32.xlu0 %v389_v51, %s895_s30 }
  0xb3   : > { %400 = vrot.lane.b32.xlu1 %v393_v55, %s895_s30  ;;  %s832_s30 = scalar_lea.vmem %s831_s26, 768 }
  0xb4   : > { %p834_p1 = scmp.lt.s32.totalorder %s832_s30, %s826_s23 }
  0xb5   : > { %434 = vrot.lane.b32.xlu0 %v428_v54, %s896_s6 }
  0xb6   : > { %p835_p2 = por %p834_p1, %p833_p0 }
  0xb7   : > { %436 = vrot.lane.b32.xlu1 %v432_v59, %s896_s6 }
  0xb8   : > { %p836_p3 = pnand %p835_p2, %p829_p13 }
  0xb9   : > { %438 = vrot.lane.b32.xlu0 %v429_v58, %s896_s6 }
  0xbb   : > { %440 = vrot.lane.b32.xlu1 %v433_v61, %s896_s6 }
  0xbd   : > { %474 = vrot.lane.b32.xlu0 %v468_v60, %s897_s7 }
  0xbf   : > { %476 = vrot.lane.b32.xlu1 %v472_v0, %s897_s7 }
  0xc1   : > { %478 = vrot.lane.b32.xlu0 %v469_v62, %s897_s7 }
  0xc3   : > { %480 = vrot.lane.b32.xlu1 %v473_v2, %s897_s7 }
  0xc5   : > { %514 = vrot.lane.b32.xlu0 %v508_v1, %s898_s8 }
  0xc7   : > { %516 = vrot.lane.b32.xlu1 %v512_v6, %s898_s8 }
  0xc9   : > { %518 = vrot.lane.b32.xlu0 %v509_v5, %s898_s8 }
  0xcb   : > { %520 = vrot.lane.b32.xlu1 %v513_v8, %s898_s8 }
  0xcd   : > { %554 = vrot.lane.b32.xlu0 %v548_v7, %s899_s9 }
  0xcf   : > { %556 = vrot.lane.b32.xlu1 %v552_v10, %s899_s9 }
  0xd1   : > { %558 = vrot.lane.b32.xlu0 %v549_v9, %s899_s9 }
  0xd3   : > { %560 = vrot.lane.b32.xlu1 %v553_v12, %s899_s9 }
  0xd5   : > { %618 = vperm.xlu0 %822, %v1013_v11  }
  0xd7   : > { %640 = vperm.xlu1 %823, %v1013_v11  }
  0xd9   : > { %825 = vset.pattern.permute.xlu0 %v900_v13 }
  0xdb   : > { %824 = vset.pattern.permute.xlu1 %v900_v13 }
  0xdc   : > { %662 = vperm.xlu1 %824, %v1013_v11  }
 0x107   : > { %v275_v17 = vpop.permute.xlu0 %274 }
 0x109   : > { %v277_v18 = vpop.permute.xlu1 %276 }
 0x10a   : > { %v283_v40 = vsel %vm282_vm0, %v275_v17, %v277_v18 }
 0x10b   : > { %v279_v20 = vpop.permute.xlu0 %278  ;;  %v289_v48 = vadd.f32 %v283_v40, %v249_v41 }
 0x10c   : > { %v284_v45 = vsel %vm282_vm0, %v277_v18, %v279_v20 }
 0x10d   : > { %v281_v21 = vpop.permute.xlu1 %280  ;;  %v290_v54 = vadd.f32 %v284_v45, %v250_v47 }
 0x10e   : > { %v285_v50 = vsel %vm282_vm0, %v279_v20, %v281_v21 }
 0x10f   : > { %v315_v22 = vpop.permute.xlu0 %314  ;;  %v291_v59 = vadd.f32 %v285_v50, %v251_v53 }
 0x111   : > { %v317_v23 = vpop.permute.xlu1 %316 }
 0x112   : > { %v323_v46 = vsel %vm322_vm1, %v315_v22, %v317_v23 }
 0x113   : > { %v319_v24 = vpop.permute.xlu0 %318  ;;  %v329_v55 = vadd.f32 %v323_v46, %v289_v48  ;;  %v607_v48 = vsub.s32 1, %v1021_v19 }
 0x114   : > { %v324_v51 = vsel %vm322_vm1, %v317_v23, %v319_v24 }
 0x115   : > { %v321_v25 = vpop.permute.xlu1 %320  ;;  %v330_v60 = vadd.f32 %v324_v51, %v290_v54  ;;  %v629_v51 = vsub.s32 2, %v1021_v19 }
 0x116   : > { %v325_v56 = vsel %vm322_vm1, %v319_v24, %v321_v25 }
 0x117   : > { %v355_v26 = vpop.permute.xlu0 %354  ;;  %v331_v1 = vadd.f32 %v325_v56, %v291_v59 }
 0x119   : > { %v357_v27 = vpop.permute.xlu1 %356 }
 0x11a   : > { %v363_v52 = vsel %vm362_vm2, %v355_v26, %v357_v27 }
 0x11b   : > { %v359_v28 = vpop.permute.xlu0 %358  ;;  %v369_v61 = vadd.f32 %v363_v52, %v329_v55 }
 0x11c   : > { %v364_v57 = vsel %vm362_vm2, %v357_v27, %v359_v28 }
 0x11d   : > { %v361_v29 = vpop.permute.xlu1 %360  ;;  %v370_v2 = vadd.f32 %v364_v57, %v330_v60 }
 0x11e   : > { %v365_v63 = vsel %vm362_vm2, %v359_v28, %v361_v29 }
 0x11f   : > { %v395_v30 = vpop.permute.xlu0 %394  ;;  %v371_v8 = vadd.f32 %v365_v63, %v331_v1  ;;  %v651_v1 = vsub.s32 3, %v1021_v19 }
 0x121   : > { %v397_v31 = vpop.permute.xlu1 %396 }
 0x122   : > { %v403_v58 = vsel %vm402_vm3, %v395_v30, %v397_v31 }
 0x123   : > { %v399_v11 = vpop.permute.xlu0 %398  ;;  %v409_v3 = vadd.f32 %v403_v58, %v369_v61 }
 0x124   : > { %v404_v0 = vsel %vm402_vm3, %v397_v31, %v399_v11 }
 0x125   : > { %v401_v32 = vpop.permute.xlu1 %400  ;;  %v410_v9 = vadd.f32 %v404_v0, %v370_v2 }
 0x126   : > { %v405_v5 = vsel %vm402_vm3, %v399_v11, %v401_v32 }
 0x127   : > { %v435_v33 = vpop.permute.xlu0 %434  ;;  %v411_v18 = vadd.f32 %v405_v5, %v371_v8 }
 0x129   : > { %v437_v34 = vpop.permute.xlu1 %436 }
 0x12a   : > { %v443_v44 = vsel %vm442_vm4, %v435_v33, %v437_v34 }
 0x12b   : > { %v439_v35 = vpop.permute.xlu0 %438  ;;  %v449_v10 = vadd.f32 %v443_v44, %v409_v3 }
 0x12c   : > { %v444_v6 = vsel %vm442_vm4, %v437_v34, %v439_v35 }
 0x12d   : > { %v441_v36 = vpop.permute.xlu1 %440  ;;  %v450_v20 = vadd.f32 %v444_v6, %v410_v9 }
 0x12e   : > { %v445_v13 = vsel %vm442_vm4, %v439_v35, %v441_v36  ;;  %v584_v35 = vsub.s32 0, %v1021_v19 }
 0x12f   : > { %v475_v37 = vpop.permute.xlu0 %474  ;;  %v451_v25 = vadd.f32 %v445_v13, %v411_v18 }
 0x131   : > { %v477_v39 = vpop.permute.xlu1 %476 }
 0x132   : > { %v483_v7 = vsel %vm482_vm5, %v475_v37, %v477_v39 }
 0x133   : > { %v479_v42 = vpop.permute.xlu0 %478  ;;  %v489_v21 = vadd.f32 %v483_v7, %v449_v10 }
 0x134   : > { %v484_v14 = vsel %vm482_vm5, %v477_v39, %v479_v42 }
 0x135   : > { %v481_v49 = vpop.permute.xlu1 %480  ;;  %v490_v26 = vadd.f32 %v484_v14, %v450_v20 }
 0x136   : > { %v485_v23 = vsel %vm482_vm5, %v479_v42, %v481_v49 }
 0x137   : > { %v515_v43 = vpop.permute.xlu0 %514  ;;  %v491_v31 = vadd.f32 %v485_v23, %v451_v25 }
 0x139   : > { %v517_v62 = vpop.permute.xlu1 %516 }
 0x13a   : > { %v523_v17 = vsel %vm522_vm6, %v515_v43, %v517_v62 }
 0x13b   : > { %v519_v4 = vpop.permute.xlu0 %518  ;;  %v529_v27 = vadd.f32 %v523_v17, %v489_v21 }
 0x13c   : > { %v524_v24 = vsel %vm522_vm6, %v517_v62, %v519_v4 }
 0x13d   : > { %v521_v12 = vpop.permute.xlu1 %520  ;;  %v530_v11 = vadd.f32 %v524_v24, %v490_v26 }
 0x13e   : > { %v525_v29 = vsel %vm522_vm6, %v519_v4, %v521_v12 }
 0x13f   : > { %v555_v22 = vpop.permute.xlu0 %554  ;;  %v531_v36 = vadd.f32 %v525_v29, %v491_v31 }
 0x141   : > { %v557_v28 = vpop.permute.xlu1 %556 }
 0x142   : > { %v563_v30 = vsel %vm562_vm7, %v555_v22, %v557_v28 }
 0x143   : > { %v569_v32 = vadd.f32 %v563_v30, %v529_v27  ;;  %v559_v33 = vpop.permute.xlu0 %558 }
 0x144   : > { %v564_v34 = vsel %vm562_vm7, %v557_v28, %v559_v33 }
 0x145   : > { %v572_v37 = vmax.f32 %v569_v32, 0.0  ;;  %v570_v38 = vadd.f32 %v564_v34, %v530_v11  ;;  %v561_v39 = vpop.permute.xlu1 %560 }
 0x146   : > { %v565_v40 = vsel %vm562_vm7, %v559_v33, %v561_v39 }
 0x147   : > { %v573_v41 = vmax.f32 %v570_v38, 0.0  ;;  %v571_v42 = vadd.f32 %v565_v40, %v531_v36  ;;  %v585_v45 = vrot.slane %v572_v37, %v584_v35  ;;  %v608_v54 = vrot.slane %v572_v37, %v607_v48 }
 0x148   : > { %v630_v58 = vrot.slane %v572_v37, %v629_v51  ;;  %v652_v8 = vrot.slane %v572_v37, %v651_v1 }
 0x149   : > { %v574_v46 = vmax.f32 %v571_v42, 0.0  ;;  %v589_v47 = vrot.slane %v573_v41, %v584_v35  ;;  %v599_v50 = vmul.f32 %v1066_v15, %v585_v45  ;;  %v612_v55 = vrot.slane %v573_v41, %v607_v48 }
 0x14a   : > { %v634_v44 = vrot.slane %v573_v41, %v629_v51  ;;  %v656_v9 = vrot.slane %v573_v41, %v651_v1 }
 0x14b   : > { %v593_v49 = vrot.slane %v574_v46, %v584_v35  ;;  %v600_v52 = vmul.f32 %v1066_v15, %v589_v47  ;;  %v616_v43 = vrot.slane %v574_v46, %v607_v48  ;;  %v602_v57 = vadd.f32 %v599_v50, %v1068_v16 }
 0x14c   : > { %v660_v10 = vrot.slane %v574_v46, %v651_v1 }
 0x14d   : > { %v601_v53 = vmul.f32 %v1066_v15, %v593_v49  ;;  %v603_v59 = vadd.f32 %v600_v52, %v1068_v16  ;;  %v638_v15 = vrot.slane %v574_v46, %v629_v51 }
 0x14f   : > { %v604_v63 = vadd.f32 %v601_v53, %v1068_v16 }
 0x150   : > { %v619_v56 = vpop.permute.xlu0 %618 }
 0x151   : > { %v621_v60 = vmul.f32 %v619_v56, %v608_v54  ;;  %v622_v61 = vmul.f32 %v619_v56, %v612_v55  ;;  %v623_v62 = vmul.f32 %v619_v56, %v616_v43 }
 0x152   : > { %v641_v0 = vpop.permute.xlu1 %640 }
 0x153   : > { %v624_v2 = vadd.f32 %v621_v60, %v602_v57  ;;  %v625_v3 = vadd.f32 %v622_v61, %v603_v59  ;;  %v643_v4 = vmul.f32 %v641_v0, %v630_v58  ;;  %v626_v5 = vadd.f32 %v623_v62, %v604_v63 }
 0x154   : > { %v644_v6 = vmul.f32 %v641_v0, %v634_v44  ;;  %v645_v7 = vmul.f32 %v641_v0, %v638_v15 }
 0x155   : > { %v646_v12 = vadd.f32 %v643_v4, %v624_v2 }
 0x156   : > { %v647_v13 = vadd.f32 %v644_v6, %v625_v3  ;;  %v648_v16 = vadd.f32 %v645_v7, %v626_v5 }
 0x157   : > { %v663_v14 = vpop.permute.xlu1 %662 }
 0x158   : > { %v665_v17 = vmul.f32 %v663_v14, %v652_v8  ;;  %v666_v19 = vmul.f32 %v663_v14, %v656_v9  ;;  %v667_v18 = vmul.f32 %v663_v14, %v660_v10 }
 0x15a   : > { %v668_v20 = vadd.f32 %v665_v17, %v646_v12  ;;  %v669_v21 = vadd.f32 %v666_v19, %v647_v13  ;;  %v670_v22 = vadd.f32 %v667_v18, %v648_v16 }
 0x15c   : > { %671 = vst [vmem:[%s217_s13] sm:$0xff] %v668_v20  ;;  %672 = vst [vmem:[%s217_s13 + $0x8] sm:$0xff] %v669_v21 }
 0x15d   : > { %673 = vst [vmem:[%s217_s13 + $0x10] sm:$0xff] %v670_v22 }
 0x15e   : > { %839 = shalt.err (!%p836_p3)
}
 0x15f   : > { %s840_s6 = scalar_lea.hbm %s1112_s17, 384  ;;  %s844_s9 = scalar_lea.hbm %s1160_s5, 768 }
 0x160   : > { %p841_p4 = scmp.ne.s32.totalorder %s1112_s17, %s840_s6  ;;  %p845_p9 = scmp.lt.s32.totalorder %s1112_s17, %s1160_s5 }
 0x161   : > { %p846_p10 = scmp.lt.s32.totalorder %s844_s9, %s840_s6 }
 0x162   : > { %p842_p7 = pnand %p841_p4, %p970_p5 }
 0x163   : > { %p847_p11 = por %p846_p10, %p845_p9 }
 0x164   : > { %p843_p8 = pneg %p842_p7 }
 0x166   : > { %p848_p12 = pnand %p847_p11, %p843_p8 }
 0x168   : > { %851 = shalt.err (!%p848_p12)
}
 0x169   : > { %768 = dma.vmem_to_hbm [thread:$0]  (%p970_p5), %s1114_s14, 384, %s1112_s17, %s675_s22  }
 0x16a PF: > { %p774_p13 = scmp.ge.s32.totalorder %s886_s21, 2  ;;  %s701_s12 = sand.u32 1, %s874_s18  }
 0x16b   : > { %s702_s13 = scalar_lea.sflag [#allocation3], %s701_s12 }
 0x16c   : > { %p771_p0 = pnand %p774_p13, %p974_p6 }
 0x16e   : > { %p772_p1 = pneg %p771_p0 }
 0x170   : > { %869 = dma.done.wait (%p772_p1), %s702_s13, 384  }
 0x171   : > { %871 = vsyncadd (%p772_p1), %s702_s13, 4294966912  ;;  %p15_p2 = scmp.ge.s32.totalorder %s957_s24, 4   ;;  %s1163_s18 = smov %s878_s19 }
 0x172   : > { %s1164_s19 = smov %s882_s20  ;;  %s1165_s20 = smov %s968_s27 }
 0x173   : > { %s1166_s21 = smov %s957_s24  ;;  %17 = sbr.rel (!%p15_p2) target bundleno = 3 (0x3), region = 83 }
 0x178   :  { %707 = vsyncpa [#allocation3], 1 }
 0x179   :  { %709 = vsyncpa [#allocation3 + $0x1], 1 }

</bundles_post_ra>
